<compile_context>
chip_gen: v7x
topology: tpu7x:2x2x1
jax: 0.10.0
libtpu: 0.0.40
codegen_flags: <defaults>
</compile_context>

<pallas_src>
import functools

import jax
import jax.numpy as jnp
from jax.experimental import pallas as pl
from jax.experimental.pallas import tpu as pltpu


def _round_up(x, m):
    return (x + m - 1) // m * m


def _cdiv(a, b):
    return -(-a // b)


def _tpu_config():
    """Best-effort (per-core VMEM bytes, #TensorCores spanned by a 'parallel' axis)."""
    vmem = 64 << 20          # conservative default = v7x per-TC VMEM
    n_tc = 1
    try:
        info = pltpu.get_tpu_info()
        v = getattr(info, "vmem_capacity_bytes", None)
        if v:
            vmem = int(v)
    except Exception:
        pass
    try:
        kind = jax.devices()[0].device_kind.lower()
        if any(t in kind for t in ("v7", "v4", "v5p")):   # dual-TensorCore chips
            n_tc = 2
    except Exception:
        pass
    return vmem, n_tc


def _pick_pack_factor(B, in_dim):
    """Logical rows packed per 128-lane physical row.

    Packing is only used when it keeps the wrapper reshape a free contiguous
    relabel (B % k == 0); otherwise we would have to copy/pad x in HBM, which
    costs more than the lane density saves.
    """
    if in_dim >= 128:
        return 1
    k = max(1, min(8, 128 // in_dim))
    while k > 1 and B % k != 0:
        k //= 2
    return max(1, k)


def _pack_params(params, in_dim, out_dim, k, dtype):
    """Pack block-diagonal weights/biases (k logical rows / physical row) into one slab.

    Slab layout (lane width L = k*16):
      rows [0, k*in_dim)        W3 block-diagonal        (k*in_dim, k*16)
      row  r_b3                 b3 tiled                 (1, k*16)
      rows [r_w4, r_w4+k*16)    W4 block-diag, padded    per-block cols 6:16 zero
      row  r_b4                 b4 tiled, padded
      rows [r_w2, r_w2+k*16)    W2 block-diag, padded    per-block rows 6:16 zero,
                                                         block i in cols [i*out_dim, ...)
      row  r_b2                 b2 tiled                 (only cols [0, k*out_dim) used)
    Zero padding keeps every matmul a clean full-width dot without changing the
    math (padded activations stay exactly 0 through LeakyReLU).
    For out_dim == 2, W2/b2 are post-multiplied by D = [[1,-1],[-1,1]] so that a
    plain sigmoid in the kernel equals the 2-class softmax.
    """
    w3 = jnp.asarray(params["w3"], jnp.float32).reshape(in_dim, 16)
    b3 = jnp.asarray(params["b3"], jnp.float32).reshape(16)
    w4 = jnp.asarray(params["w4"], jnp.float32).reshape(16, 6)
    b4 = jnp.asarray(params["b4"], jnp.float32).reshape(6)
    w2 = jnp.asarray(params["w2"], jnp.float32).reshape(6, out_dim)
    b2 = jnp.asarray(params["b2"], jnp.float32).reshape(out_dim)

    if out_dim == 2:
        d = jnp.array([[1.0, -1.0], [-1.0, 1.0]], jnp.float32)
        w2 = w2 @ d
        b2 = b2 @ d

    w4p = jnp.zeros((16, 16), jnp.float32).at[:, :6].set(w4)
    b4p = jnp.zeros((16,), jnp.float32).at[:6].set(b4)
    w2p = jnp.zeros((16, out_dim), jnp.float32).at[:6, :].set(w2)

    KI, KH, KO = k * in_dim, k * 16, k * out_dim
    L = KH

    def block_diag(blk, rows, cols):
        m = jnp.zeros((k * rows, L), jnp.float32)
        for i in range(k):
            m = m.at[i * rows:(i + 1) * rows, i * cols:(i + 1) * cols].set(blk)
        return m

    r_b3 = _round_up(KI, 8)
    r_w4 = r_b3 + 8
    r_b4 = r_w4 + KH
    r_w2 = r_b4 + 8
    r_b2 = r_w2 + KH
    nrows = r_b2 + 8

    slab = jnp.zeros((nrows, L), jnp.float32)
    slab = slab.at[0:KI, :].set(block_diag(w3, in_dim, 16))
    slab = slab.at[r_b3, :].set(jnp.tile(b3, k))
    slab = slab.at[r_w4:r_w4 + KH, :].set(block_diag(w4p, 16, 16))
    slab = slab.at[r_b4, :].set(jnp.tile(b4p, k))
    slab = slab.at[r_w2:r_w2 + KH, :].set(block_diag(w2p, 16, out_dim))
    slab = slab.at[r_b2, 0:KO].set(jnp.tile(b2, k))

    lay = dict(KI=KI, KH=KH, KO=KO, r_b3=r_b3, r_w4=r_w4, r_b4=r_b4,
               r_w2=r_w2, r_b2=r_b2)
    return slab.astype(dtype), lay


def _head_kernel(x_ref, w_ref, o_ref, *, lay):
    """Fused MLP head for one batch tile. All operands live in VMEM."""
    KI, KH, KO = lay["KI"], lay["KH"], lay["KO"]
    cdt = x_ref.dtype            # keep the MXU in the input dtype (bf16 stays single-pass)

    x = x_ref[...]                                            # (bt, KI)

    # dense3 + LeakyReLU(0.2)
    h = jnp.dot(x, w_ref[0:KI, :], preferred_element_type=jnp.float32)
    h = h + w_ref[lay["r_b3"]:lay["r_b3"] + 1, :].astype(jnp.float32)
    h = jnp.where(h >= 0, h, 0.2 * h)

    # dense4 + LeakyReLU(0.2)
    h = jnp.dot(h.astype(cdt), w_ref[lay["r_w4"]:lay["r_w4"] + KH, :],
                preferred_element_type=jnp.float32)
    h = h + w_ref[lay["r_b4"]:lay["r_b4"] + 1, :].astype(jnp.float32)
    h = jnp.where(h >= 0, h, 0.2 * h)

    # dense2 (for out_dim==2 the softmax difference matrix is pre-folded into w2/b2)
    out = jnp.dot(h.astype(cdt), w_ref[lay["r_w2"]:lay["r_w2"] + KH, :],
                  preferred_element_type=jnp.float32)
    out = out + w_ref[lay["r_b2"]:lay["r_b2"] + 1, :].astype(jnp.float32)
    out = out[:, 0:KO]

    # sigmoid == out_dim==1 activation == 2-class softmax (after the D fold).
    # exp on the EUP; overflow of exp(-z) saturates cleanly to 0.
    o_ref[...] = (1.0 / (1.0 + jnp.exp(-out))).astype(o_ref.dtype)


def _pick_batch_tile(Bp, per_row_bytes, requested, budget_bytes, n_tc, sub):
    """Deepest tile that fits the per-generation VMEM budget; on dual-TC chips
    the step count is forced to a multiple of n_tc so both cores get equal work."""
    if Bp <= sub:
        return Bp                                    # single full-extent block
    cap = max(sub, (budget_bytes // max(per_row_bytes, 1)) // sub * sub)
    bt = max(sub, (min(int(requested), cap) // sub) * sub)
    if n_tc > 1:
        steps = _round_up(max(n_tc, _cdiv(Bp, bt)), n_tc)
        bt = max(sub, _round_up(_cdiv(Bp, steps), sub))
    return min(bt, _round_up(Bp, sub))


def _forward_2d(x2d, slab, lay, requested_bt, vmem_cap, n_tc):
    """One fused pallas_call over a (Bp, KI) packed-or-plain 2-D input."""
    Bp, KI = x2d.shape
    KH, KO = lay["KH"], lay["KO"]
    itemsize = x2d.dtype.itemsize
    sub = 16 if x2d.dtype == jnp.bfloat16 else 8

    # Per-physical-row VMEM cost: double-buffered x + out tiles plus ~3 f32
    # intermediates of the hidden width (also guards very wide in_dim).
    row_in = _round_up(KI, 128) * itemsize
    row_out = _round_up(KO, 128) * 4
    row_h = _round_up(KH, 128) * 4
    per_row = 2 * (row_in + row_out) + 3 * row_h

    budget = max(1 << 20, vmem_cap // 2)
    bt = _pick_batch_tile(Bp, per_row, requested_bt, budget, n_tc, sub)
    grid = (_cdiv(Bp, bt),)

    slab_bytes = slab.shape[0] * _round_up(slab.shape[1], 128) * slab.dtype.itemsize
    vmem_limit = int(min(max(per_row * bt + 2 * slab_bytes + (2 << 20), 16 << 20),
                         max(16 << 20, vmem_cap - (8 << 20))))

    cost = pl.CostEstimate(
        flops=2 * Bp * (KI * KH + KH * KH + KH * KO),
        transcendentals=Bp * KO,
        bytes_accessed=Bp * KI * itemsize + Bp * KO * 4 + slab_bytes)

    return pl.pallas_call(
        functools.partial(_head_kernel, lay=lay),
        out_shape=jax.ShapeDtypeStruct((Bp, KO), jnp.float32),
        grid_spec=pltpu.PrefetchScalarGridSpec(
            num_scalar_prefetch=0,
            grid=grid,
            in_specs=[
                # x streamed in deep batch tiles; the ragged tail is a Pallas
                # partial last block (no host-side pad/copy of x).
                pl.BlockSpec((bt, KI), lambda i: (i, 0)),
                # single resident weight slab (constant block index -> one DMA).
                pl.BlockSpec(slab.shape, lambda i: (0, 0)),
            ],
            out_specs=pl.BlockSpec((bt, KO), lambda i: (i, 0)),
        ),
        compiler_params=pltpu.CompilerParams(
            dimension_semantics=("parallel",),
            vmem_limit_bytes=vmem_limit),
        cost_estimate=cost,
    )(x2d, slab)


def classification_head(x, params, out_dim, *, batch_tile=4096):
    """Fused ClassificationHead forward.

    x:       (B, in_dim) float32 or bfloat16.
    params:  w3 (in_dim,16), b3 (16,), w4 (16,6), b4 (6,), w2 (6,out_dim),
             b2 (out_dim,)   in y = x @ W + b layout (pass PyTorch weights as W.T).
    returns: (B, out_dim) float32 probabilities.
    """
    B, in_dim = x.shape
    assert out_dim in (1, 2), "ClassificationHead.forward only defines out_dim in {1, 2}"

    vmem_cap, n_tc = _tpu_config()

    # Lane packing: k logical rows per 128-lane physical row (free contiguous
    # reshape + block-diagonal weights) removes the in_dim << 128 lane padding.
    # TODO(synk): when B % k != 0 we fall back to the unpacked layout instead of
    # slicing/padding x (which would copy the whole array in HBM); producers that
    # emit k-divisible batches get the full 4x traffic saving.
    k = _pick_pack_factor(B, in_dim)
    slab, lay = _pack_params(params, in_dim, out_dim, k, x.dtype)

    x2d = x if k == 1 else x.reshape(B // k, k * in_dim)
    out = _forward_2d(x2d, slab, lay, batch_tile, vmem_cap, n_tc)
    return out if k == 1 else out.reshape(B, out_dim)


def init_params(key, in_dim, out_dim):
    """Deterministic synthetic parameters matching nn.Linear shapes (stored transposed)."""
    ks = jax.random.split(key, 6)
    s = 0.1
    return dict(
        w3=jax.random.normal(ks[0], (in_dim, 16), jnp.float32) * s,
        b3=jax.random.normal(ks[1], (16,), jnp.float32) * s,
        w4=jax.random.normal(ks[2], (16, 6), jnp.float32) * s,
        b4=jax.random.normal(ks[3], (6,), jnp.float32) * s,
        w2=jax.random.normal(ks[4], (6, out_dim), jnp.float32) * s,
        b2=jax.random.normal(ks[5], (out_dim,), jnp.float32) * s)


def _reference(x, p, out_dim):
    lrelu = lambda v: jnp.where(v >= 0, v, 0.2 * v)
    h = lrelu(x @ p["w3"] + p["b3"])
    h = lrelu(h @ p["w4"] + p["b4"])
    o = h @ p["w2"] + p["b2"]
    return jax.nn.sigmoid(o) if out_dim == 1 else jax.nn.softmax(o, axis=-1)


if __name__ == "__main__":
    key = jax.random.PRNGKey(0)
    kx, kx2, kp1, kp2 = jax.random.split(key, 4)

    in_dim = 32

    # --- small f32 check, out_dim=2 (softmax); B % 4 == 0 exercises lane packing ---
    B = 16
    x = jax.random.normal(kx, (B, in_dim), jnp.float32)
    p2 = init_params(kp1, in_dim, 2)
    y2 = classification_head(x, p2, out_dim=2)
    jax.block_until_ready(y2)
    assert y2.shape == (B, 2)
    assert jnp.allclose(y2, _reference(x, p2, 2), atol=1e-5, rtol=1e-5)

    # --- out_dim=1 (sigmoid) path ---
    p1 = init_params(kp2, in_dim, 1)
    y1 = classification_head(x, p1, out_dim=1)
    jax.block_until_ready(y1)
    assert y1.shape == (B, 1)
    assert jnp.allclose(y1, _reference(x, p1, 1), atol=1e-5, rtol=1e-5)

    # --- larger packed batch (B % 4 == 0) ---
    B2 = 300
    xb = jax.random.normal(kx2, (B2, in_dim), jnp.float32)
    yb = classification_head(xb, p2, out_dim=2)
    jax.block_until_ready(yb)
    assert yb.shape == (B2, 2)
    assert jnp.allclose(yb, _reference(xb, p2, 2), atol=1e-5, rtol=1e-5)

    # --- ragged batch that defeats packing: unpacked fallback + Pallas partial
    #     last block (no host-side pad/copy of x) ---
    B3 = 301
    xr = jax.random.normal(kx2, (B3, in_dim), jnp.float32)
    yr = classification_head(xr, p2, out_dim=2)
    jax.block_until_ready(yr)
    assert yr.shape == (B3, 2)
    assert jnp.allclose(yr, _reference(xr, p2, 2), atol=1e-5, rtol=1e-5)

    # --- bf16 input path (bf16 x and weights, f32 MXU accumulation) ---
    xb16 = xb.astype(jnp.bfloat16)
    yb16 = classification_head(xb16, p2, out_dim=2)
    jax.block_until_ready(yb16)
    p2_bf16 = {kk: vv.astype(jnp.bfloat16).astype(jnp.float32) for kk, vv in p2.items()}
    ref16 = _reference(xb16.astype(jnp.float32), p2_bf16, 2)
    assert jnp.allclose(yb16, ref16, atol=2e-2)

    print("KERNEL_OK")
</pallas_src>

<mosaic_0001>
module attributes {stable_mosaic.version = 11 : i64} {
  func.func @_head_kernel(%arg0: i32, %arg1: memref<4x128xf32, #tpu.memory_space<vmem>>, %arg2: memref<280x64xf32, #tpu.memory_space<vmem>>, %arg3: memref<4x8xf32, #tpu.memory_space<vmem>>) attributes {dimension_semantics = [#tpu.dimension_semantics<parallel>], iteration_bounds = array<i64: 1>, scalar_prefetch = 0 : i64, scratch_operands = 0 : i64, tpu.core_type = #tpu.core_type<tc>, window_params = [{transform_indices = @transform_0, window_bounds = array<i64: 4, 128>}, {pipeline_mode = #tpu.pipeline_mode<synchronous>, transform_indices = @transform_1, window_bounds = array<i64: 280, 64>}, {transform_indices = @transform_2, window_bounds = array<i64: 4, 8>}]} {
    %c0 = arith.constant 0 : index
    %c0_0 = arith.constant 0 : index
    %0 = vector.load %arg1[%c0, %c0_0] : memref<4x128xf32, #tpu.memory_space<vmem>>, vector<4x128xf32>
    %c0_1 = arith.constant 0 : index
    %c0_2 = arith.constant 0 : index
    %1 = vector.load %arg2[%c0_1, %c0_2] : memref<280x64xf32, #tpu.memory_space<vmem>>, vector<128x64xf32>
    %cst = arith.constant dense<0.000000e+00> : vector<4x64xf32>
    %2 = tpu.matmul %0, %1, %cst {dimension_numbers = #tpu.dot_dimension_numbers<[1], [0], [0], [1], [0, 0, 1, 1], [], []>} : vector<4x128xf32>, vector<128x64xf32>, vector<4x64xf32> -> vector<4x64xf32>
    %c128 = arith.constant 128 : index
    %c0_3 = arith.constant 0 : index
    %3 = vector.load %arg2[%c128, %c0_3] : memref<280x64xf32, #tpu.memory_space<vmem>>, vector<1x64xf32>
    %4 = vector.broadcast %3 : vector<1x64xf32> to vector<4x64xf32>
    %5 = arith.addf %2, %4 : vector<4x64xf32>
    %cst_4 = arith.constant 0.000000e+00 : f32
    %6 = vector.broadcast %cst_4 : f32 to vector<4x64xf32>
    %7 = arith.cmpf oge, %5, %6 : vector<4x64xf32>
    %cst_5 = arith.constant 2.000000e-01 : f32
    %8 = vector.broadcast %cst_5 : f32 to vector<4x64xf32>
    %9 = arith.mulf %8, %5 : vector<4x64xf32>
    %10 = arith.select %7, %5, %9 : vector<4x64xi1>, vector<4x64xf32>
    %c136 = arith.constant 136 : index
    %c0_6 = arith.constant 0 : index
    %11 = vector.load %arg2[%c136, %c0_6] : memref<280x64xf32, #tpu.memory_space<vmem>>, vector<64x64xf32>
    %cst_7 = arith.constant dense<0.000000e+00> : vector<4x64xf32>
    %12 = tpu.matmul %10, %11, %cst_7 {dimension_numbers = #tpu.dot_dimension_numbers<[1], [0], [0], [1], [0, 0, 1, 1], [], []>} : vector<4x64xf32>, vector<64x64xf32>, vector<4x64xf32> -> vector<4x64xf32>
    %c200 = arith.constant 200 : index
    %c0_8 = arith.constant 0 : index
    %13 = vector.load %arg2[%c200, %c0_8] : memref<280x64xf32, #tpu.memory_space<vmem>>, vector<1x64xf32>
    %14 = vector.broadcast %13 : vector<1x64xf32> to vector<4x64xf32>
    %15 = arith.addf %12, %14 : vector<4x64xf32>
    %cst_9 = arith.constant 0.000000e+00 : f32
    %16 = vector.broadcast %cst_9 : f32 to vector<4x64xf32>
    %17 = arith.cmpf oge, %15, %16 : vector<4x64xf32>
    %cst_10 = arith.constant 2.000000e-01 : f32
    %18 = vector.broadcast %cst_10 : f32 to vector<4x64xf32>
    %19 = arith.mulf %18, %15 : vector<4x64xf32>
    %20 = arith.select %17, %15, %19 : vector<4x64xi1>, vector<4x64xf32>
    %c208 = arith.constant 208 : index
    %c0_11 = arith.constant 0 : index
    %21 = vector.load %arg2[%c208, %c0_11] : memref<280x64xf32, #tpu.memory_space<vmem>>, vector<64x64xf32>
    %cst_12 = arith.constant dense<0.000000e+00> : vector<4x64xf32>
    %22 = tpu.matmul %20, %21, %cst_12 {dimension_numbers = #tpu.dot_dimension_numbers<[1], [0], [0], [1], [0, 0, 1, 1], [], []>} : vector<4x64xf32>, vector<64x64xf32>, vector<4x64xf32> -> vector<4x64xf32>
    %c272 = arith.constant 272 : index
    %c0_13 = arith.constant 0 : index
    %23 = vector.load %arg2[%c272, %c0_13] : memref<280x64xf32, #tpu.memory_space<vmem>>, vector<1x64xf32>
    %24 = vector.broadcast %23 : vector<1x64xf32> to vector<4x64xf32>
    %25 = arith.addf %22, %24 : vector<4x64xf32>
    %26 = vector.extract_strided_slice %25 {offsets = [0, 0], sizes = [4, 8], strides = [1, 1]} : vector<4x64xf32> to vector<4x8xf32>
    %cst_14 = arith.constant 0.000000e+00 : f32
    %27 = vector.broadcast %cst_14 : f32 to vector<4x8xf32>
    %28 = arith.subf %27, %26 : vector<4x8xf32>
    %29 = math.exp %28 : vector<4x8xf32>
    %cst_15 = arith.constant 1.000000e+00 : f32
    %30 = vector.broadcast %cst_15 : f32 to vector<4x8xf32>
    %31 = arith.addf %30, %29 : vector<4x8xf32>
    %cst_16 = arith.constant 1.000000e+00 : f32
    %32 = vector.broadcast %cst_16 : f32 to vector<4x8xf32>
    %33 = arith.divf %32, %31 : vector<4x8xf32>
    %c0_17 = arith.constant 0 : index
    %c0_18 = arith.constant 0 : index
    %34 = vector.load %arg3[%c0_17, %c0_18] : memref<4x8xf32, #tpu.memory_space<vmem>>, vector<4x8xf32>
    tpu.vector_store %arg3[%c0_17, %c0_18], %33 {strides = array<i32>} : memref<4x8xf32, #tpu.memory_space<vmem>>, vector<4x8xf32>,
    return
  }
  func.func @transform_0(%arg0: i32) -> (i32, i32) {
    %c0_i32 = arith.constant 0 : i32
    %c0_i32_0 = arith.constant 0 : i32
    return %arg0, %c0_i32 : i32, i32
  }
  func.func @transform_1(%arg0: i32) -> (i32, i32) {
    %c0_i32 = arith.constant 0 : i32
    %c0_i32_0 = arith.constant 0 : i32
    %c0_i32_1 = arith.constant 0 : i32
    return %c0_i32, %c0_i32_0 : i32, i32
  }
  func.func @transform_2(%arg0: i32) -> (i32, i32) {
    %c0_i32 = arith.constant 0 : i32
    %c0_i32_0 = arith.constant 0 : i32
    return %arg0, %c0_i32 : i32, i32
  }
}

</mosaic_0001>

<bundles_post_ra>
// kernel: tpu_custom_call.1
= control target key start
LH: loop header
LB: loop body
LE: loop exit
PB: predicated region body
PF: predicated region fallthrough
CT: control target
= control target key end

     0   :  { %v498_v3 = vmov 0.0|0.0   ;;  %vm499_vm0 = vmmov 0   ;;  %v500_v6 = vmov 0.0   ;;  %s661_s0 = inlined_call_operand.vmem [shape: f32[4,128], index: 0, kind: input, shape index: {}]   ;;  %s662_s1 = inlined_call_operand.vmem [shape: f32[280,64], index: 1, kind: input, shape index: {}]   ;;  %s663_s2 = inlined_call_operand.hbm [shape: f32[4,8], index: 2, kind: output, shape index: {}]  }
   0x1   :  { %v13_v0 = vld [vmem:[%s662_s1] sm:$0xff]  ;;  %v14_v1 = vld [vmem:[%s662_s1 + $0x8] sm:$0xff]  ;;  %v15_v2 = vld [vmem:[%s662_s1 + $0x10] sm:$0xff]  ;;  %418 = vmatprep.subr.bf16.mxu0 %v498_v3  ;;  %377 = vmatprep.mubr.msk.f32.mxu0 %vm499_vm0, %v500_v6 }
   0x2   :  { %v419_v4 = vpack.c.bf16 %v14_v1, %v13_v0  ;;  %v16_v5 = vld [vmem:[%s662_s1 + $0x18] sm:$0xff]  ;;  %442 = vmatprep.subr.bf16.mxu1 %v498_v3  ;;  %396 = vmatprep.mubr.msk.f32.mxu1 %vm499_vm0, %v500_v6  ;;  %v17_v8 = vld [vmem:[%s662_s1 + $0x20] sm:$0xff]  ;;  %v18_v9 = vld [vmem:[%s662_s1 + $0x28] sm:$0xff] }
   0x3   :  { %v422_v7 = vpack.c.bf16 %v16_v5, %v15_v2  ;;  %v107_v10 = vld [vmem:[%s662_s1 + $0x88] sm:$0xff]  ;;  %v108_v11 = vld [vmem:[%s662_s1 + $0x90] sm:$0xff]  ;;  %v109_v12 = vld [vmem:[%s662_s1 + $0x98] sm:$0xff]  ;;  %v425_v14 = vpack.c.bf16 %v18_v9, %v17_v8 }
   0x4   :  { %420 = vmatpush3.bf16.msra.mxu0 %v419_v4  ;;  %v110_v13 = vld [vmem:[%s662_s1 + $0xa0] sm:$0xff]  ;;  %v443_v15 = vpack.c.bf16 %v108_v11, %v107_v10  ;;  %v19_v16 = vld [vmem:[%s662_s1 + $0x30] sm:$0xff]  ;;  %v20_v17 = vld [vmem:[%s662_s1 + $0x38] sm:$0xff] }
   0x5   :  { %421 = vmatprep.subr.bf16.mxu0 %v498_v3 }
   0x8   :  { %423 = vmatpush3.bf16.msra.mxu0 %v422_v7 }
   0x9   :  { %424 = vmatprep.subr.bf16.mxu0 %v498_v3 }
   0xa   :  { %7 = vsyncpa [#allocation3], 0  ;;  %444 = vmatpush3.bf16.msra.mxu1 %v443_v15  ;;  %v446_v18 = vpack.c.bf16 %v110_v13, %v109_v12  ;;  %v111_v19 = vld [vmem:[%s662_s1 + $0xa8] sm:$0xff]  ;;  %v112_v20 = vld [vmem:[%s662_s1 + $0xb0] sm:$0xff]  ;;  %v428_v21 = vpack.c.bf16 %v20_v17, %v19_v16  ;;  %vm120_vm2 = vcmask 523264   ;;  %s501_s24 = smov [#allocation2]  }
   0xb   :  { %445 = vmatprep.subr.bf16.mxu1 %v498_v3  ;;  %v21_v22 = vld [vmem:[%s662_s1 + $0x40] sm:$0xff]  ;;  %v22_v23 = vld [vmem:[%s662_s1 + $0x48] sm:$0xff]  ;;  %v449_v24 = vpack.c.bf16 %v112_v20, %v111_v19  ;;  %v23_v26 = vld [vmem:[%s662_s1 + $0x50] sm:$0xff]  ;;  %s297_s25 = sshll.u32 %s501_s24, 4  ;;  %vm289_vm4 = vcmask 60416   ;;  %s298_s25 = int_to_ptr.vmem [resolvable:$true] %s297_s25 }
   0xc   :  { %426 = vmatpush3.bf16.msra.mxu0 %v425_v14  ;;  %v431_v25 = vpack.c.bf16 %v22_v23, %v21_v22  ;;  %v24_v27 = vld [vmem:[%s662_s1 + $0x58] sm:$0xff]  ;;  %v25_v29 = vld [vmem:[%s662_s1 + $0x60] sm:$0xff]  ;;  %v26_v30 = vld [vmem:[%s662_s1 + $0x68] sm:$0xff]  ;;  %s474_s26 = scalar_lea.vmem %s298_s25, 64  ;;  %p479_p1 = scmp.lt.s32.totalorder %s298_s25, %s298_s25 }
   0xd   :  { %427 = vmatprep.subr.bf16.mxu0 %v498_v3  ;;  %v434_v28 = vpack.c.bf16 %v24_v27, %v23_v26  ;;  %v437_v31 = vpack.c.bf16 %v26_v30, %v25_v29  ;;  %v27_v32 = vld [vmem:[%s662_s1 + $0x70] sm:$0xff]  ;;  %v28_v33 = vld [vmem:[%s662_s1 + $0x78] sm:$0xff]  ;;  %v12_v35 = vld [vmem:[%s661_s0] sm:$0xf]  ;;  %p475_p0 = scmp.ne.s32.totalorder %s298_s25, %s474_s26  ;;  %p480_p2 = scmp.lt.s32.totalorder %s474_s26, %s474_s26 }
   0xe   :  { %447 = vmatpush3.bf16.msra.mxu1 %v446_v18  ;;  %v440_v34 = vpack.c.bf16 %v28_v33, %v27_v32  ;;  %v113_v36 = vld [vmem:[%s662_s1 + $0xb8] sm:$0xff]  ;;  %v114_v37 = vld [vmem:[%s662_s1 + $0xc0] sm:$0xff]  ;;  %v197_v41 = vld [vmem:[%s662_s1 + $0xd0] sm:$0xff] }
   0xf   :  { %448 = vmatprep.subr.bf16.mxu1 %v498_v3  ;;  %v452_v38 = vpack.c.bf16 %v114_v37, %v113_v36  ;;  %v305_v39 = vld [vmem:[%s662_s1 + $0x80] ss:$0 sm:$0xff]  ;;  %v198_v42 = vld [vmem:[%s662_s1 + $0xd8] sm:$0xff]  ;;  %v200_v48 = vld [vmem:[%s662_s1 + $0xe8] sm:$0xff]  ;;  %p481_p3 = por %p480_p2, %p479_p1 }
  0x10   :  { %429 = vmatpush3.bf16.msra.mxu0 %v428_v21  ;;  %v455_v46 = vpack.c.bf16 %v198_v42, %v197_v41  ;;  %v199_v47 = vld [vmem:[%s662_s1 + $0xe0] sm:$0xff]  ;;  %v201_v51 = vld [vmem:[%s662_s1 + $0xf0] sm:$0xff]  ;;  %v202_v52 = vld [vmem:[%s662_s1 + $0xf8] sm:$0xff] }
  0x11   :  { %430 = vmatprep.subr.bf16.mxu0 %v498_v3  ;;  %v458_v50 = vpack.c.bf16 %v200_v48, %v199_v47  ;;  %v461_v53 = vpack.c.bf16 %v202_v52, %v201_v51  ;;  %v203_v54 = vld [vmem:[%s662_s1 + $0x100] sm:$0xff]  ;;  %v204_v55 = vld [vmem:[%s662_s1 + $0x108] sm:$0xff]  ;;  %v308_v63 = vld [vmem:[%s662_s1 + $0x110] ss:$0 sm:$0xff]  ;;  %p482_p4 = pnand %p481_p3, %p475_p0 }
  0x12   :  { %450 = vmatpush3.bf16.msra.mxu1 %v449_v24  ;;  %v464_v56 = vpack.c.bf16 %v204_v55, %v203_v54  ;;  %v306_v57 = vld [vmem:[%s662_s1 + $0xc8] ss:$0 sm:$0xff] }
  0x13   :  { %451 = vmatprep.subr.bf16.mxu1 %v498_v3 }
  0x14   :  { %432 = vmatpush3.bf16.msra.mxu0 %v431_v25 }
  0x15   :  { %433 = vmatprep.subr.bf16.mxu0 %v498_v3 }
  0x16   :  { %453 = vmatpush3.bf16.msra.mxu1 %v452_v38 }
  0x17   :  { %454 = vmatprep.subr.bf16.mxu1 %v498_v3 }
  0x18   :  { %435 = vmatpush3.bf16.msra.mxu0 %v434_v28 }
  0x19   :  { %436 = vmatprep.subr.bf16.mxu0 %v498_v3 }
  0x1c   :  { %438 = vmatpush3.bf16.msra.mxu0 %v437_v31 }
  0x1d   :  { %439 = vmatprep.subr.bf16.mxu0 %v498_v3 }
  0x20   :  { %441 = vmatpush3.bf16.msra.mxu0 %v440_v34 }
  0x23   :  { %378 = vmatmul.mubr.f32.vlgmr.msra.gmra.mrb[0].mxu0 %v12_v35 }
  0xf6   :  { %v100_v40 = vpop.f32.mrb[0].mxu0 }
  0xf7   :  { %v101_v43 = vadd.f32 %v305_v39, %v100_v40  ;;  %v379_v44 = vpop.f32.mrb[1].mxu0 }
  0xf9   :  { %vm104_vm1 = vcmp.ge.f32.partialorder %v101_v43, 0.0  ;;  %v105_v45 = vmul.f32 0.2, %v101_v43 }
  0xfb   :  { %v106_v49 = vsel %vm104_vm1, %v101_v43, %v105_v45 }
  0xfc   :  { %397 = vmatmul.mubr.msk.f32.vlgmr.msra.gmra.mrb[0].mxu1 %vm120_vm2, %v106_v49 }
  0xfd   :  { %456 = vmatpush3.bf16.msra.mxu1 %v455_v46  ;;  %415 = vmatprep.mubr.msk.f32.mxu1 %vm499_vm0, %v500_v6 }
  0xfe   :  { %457 = vmatprep.subr.bf16.mxu1 %v498_v3 }
 0x101   :  { %459 = vmatpush3.bf16.msra.mxu1 %v458_v50 }
 0x102   :  { %460 = vmatprep.subr.bf16.mxu1 %v498_v3 }
 0x105   :  { %462 = vmatpush3.bf16.msra.mxu1 %v461_v53 }
 0x106   :  { %463 = vmatprep.subr.bf16.mxu1 %v498_v3 }
 0x109   :  { %465 = vmatpush3.bf16.msra.mxu1 %v464_v56 }
 0x1cf   :  { %v190_v58 = vpop.f32.mrb[0].mxu1 }
 0x1d0   :  { %v191_v59 = vadd.f32 %v306_v57, %v190_v58  ;;  %v398_v60 = vpop.f32.mrb[1].mxu1 }
 0x1d2   :  { %vm194_vm3 = vcmp.ge.f32.partialorder %v191_v59, 0.0  ;;  %v195_v61 = vmul.f32 0.2, %v191_v59 }
 0x1d4   :  { %v196_v62 = vsel %vm194_vm3, %v191_v59, %v195_v61 }
 0x1d5   :  { %416 = vmatmul.mubr.msk.f32.vlgmr.msra.gmra.mrb[2].mxu1 %vm120_vm2, %v196_v62 }
 0x2a8   :  { %v279_v0 = vpop.f32.mrb[2].mxu1 }
 0x2a9   :  { %v280_v1 = vadd.f32 %v308_v63, %v279_v0  ;;  %v417_v2 = vpop.f32.mrb[3].mxu1 }
 0x2ab   :  { %v283_v3 = vsub.f32 0.0, %v280_v1 }
 0x2ad   :  { %v284_v4 = vmul.f32 1.442695, %v283_v3 }
 0x2af   :  { %470 = vpow2.f32 %v284_v4 }
 0x2b9   :  { %v471_v5 = vpop.eup %470 }
 0x2ba   :  { %v286_v6 = vadd.f32 1.0, %v471_v5 }
 0x2bc   :  { %472 = vrcp.f32 %v286_v6 }
 0x2c6   :  { %v473_v7 = vpop.eup %472 }
 0x2c7   :  { %290 = vst.msk [vmem:[#allocation2] sm:$0xf] %vm289_vm4, %v473_v7 }
 0x2c8   :  { %485 = shalt.err (!%p482_p4)
}
 0x2c9   :  { %s486_s28 = scalar_lea.hbm %s663_s2, 64 }
 0x2ca   :  { %p487_p5 = scmp.ne.s32.totalorder %s663_s2, %s486_s28  ;;  %p490_p6 = scmp.lt.u32.totalorder %s486_s28, %s663_s2 }
 0x2cc   :  { %p492_p7 = pnand %p490_p6, %p487_p5 }
 0x2ce   :  { %495 = shalt.err (!%p492_p7)
}
 0x2cf   :  { %300 = dma.vmem_to_hbm [thread:$0]  %s298_s25, 64, %s663_s2, [#allocation3]  }
 0x2d0   :  { %496 = dma.done.wait [#allocation3], 64  }
 0x2d1   :  { %497 = vsyncadd [#allocation3], 4294967232 }
 0x2d2   :  { %304 = vsyncpa [#allocation3], 1 }

</bundles_post_ra>
